<compile_context>
chip_gen: v7x
topology: tpu7x:2x2x1
jax: 0.10.0
libtpu: 0.0.40
codegen_flags: <defaults>
</compile_context>

<pallas_src>
import jax
import jax.numpy as jnp
from jax.experimental import pallas as pl
from jax.experimental.pallas import tpu as pltpu


LANE = 128


# ----------------------------- Pallas kernel ---------------------------------

def pose_fused_kernel(p_ref, w1_ref, b1_ref, w2_ref, b2_ref, w3_ref, b3_ref,
                      out_ref):
    """One grid step == one tile of `tm` output rows (flattened B*H*W).

    p_ref  : (tm, Kpad)   bf16 lane-dense im2col patch rows (zero-padded K)
    w1_ref : (Kpad, C1)   bf16   b1_ref: (1, C1) f32
    w2_ref : (C1, C2)     bf16   b2_ref: (1, C2) f32
    w3_ref : (C2, Kp_pad) bf16   b3_ref: (1, Kp_pad) f32
    out_ref: (tm, Kp_pad) bf16 lane-dense heatmap logits
    """
    # backbone: 3x3 conv (as matmul) + bias + ReLU   (f32 accumulation)
    h1 = jnp.dot(p_ref[...], w1_ref[...], preferred_element_type=jnp.float32)
    h1 = jnp.maximum(h1 + b1_ref[...], 0.0)

    # neck: 1x1 conv + bias + ReLU
    h2 = jnp.dot(h1.astype(jnp.bfloat16), w2_ref[...],
                 preferred_element_type=jnp.float32)
    h2 = jnp.maximum(h2 + b2_ref[...], 0.0)

    # head: 1x1 conv -> lane-padded keypoint heatmap logits (stored bf16)
    out = jnp.dot(h2.astype(jnp.bfloat16), w3_ref[...],
                  preferred_element_type=jnp.float32)
    out_ref[...] = (out + b3_ref[...]).astype(out_ref.dtype)


# ----------------------------- wrapper ----------------------------------------

def pose_estimation_forward(x_nchw, params):
    """Fused backbone->neck->head forward pass.

    x_nchw: (B, Cin, H, W) float32
    returns: (B, num_keypoints, H, W) float32 heatmaps
    """
    w1, b1, w2, b2, w3, b3 = params
    B, Cin, H, W = x_nchw.shape
    K = w1.shape[0]                 # 9*Cin
    C1 = w1.shape[1]
    C2 = w2.shape[1]
    Kp = w3.shape[1]

    Kpad = pl.cdiv(K, LANE) * LANE            # lane-dense patch width  (36 -> 128)
    Kp_pad = pl.cdiv(Kp, LANE) * LANE         # lane-dense output width (17 -> 128)

    rows = B * H * W
    # Row tile: target ~512 rows per step, but keep >= 2 grid steps (overlap / v7x TCs).
    tm = min(512, max(8, rows // 2))
    tm = max(8, (tm // 8) * 8)
    rows_pad = pl.cdiv(rows, tm) * tm
    n_tiles = rows_pad // tm

    # --- glue (wrapper-side layout plumbing; Cin<=8 so im2col here is cheaper than
    #     a lane-sparse in-kernel concat) ---
    x = jnp.transpose(x_nchw, (0, 2, 3, 1)).astype(jnp.float32)        # (B,H,W,Cin)
    xp = jnp.pad(x, ((0, 0), (1, 1), (1, 1), (0, 0)))                  # (B,H+2,W+2,Cin)
    patches = jnp.concatenate(
        [xp[:, i:i + H, j:j + W, :] for i in range(3) for j in range(3)],
        axis=-1).reshape(rows, K)                                      # (rows, 9*Cin)
    patches = jnp.pad(patches,
                      ((0, rows_pad - rows), (0, Kpad - K))).astype(jnp.bfloat16)

    # bf16 weights for the MXU (f32 accumulation in-kernel), f32 biases.
    w1p = jnp.pad(w1, ((0, Kpad - K), (0, 0))).astype(jnp.bfloat16)    # (Kpad, C1)
    w2b = w2.astype(jnp.bfloat16)                                      # (C1, C2)
    w3p = jnp.pad(w3, ((0, 0), (0, Kp_pad - Kp))).astype(jnp.bfloat16) # (C2, Kp_pad)
    b3p = jnp.pad(b3, ((0, 0), (0, Kp_pad - Kp)))                      # (1, Kp_pad)

    out_flat = pl.pallas_call(
        pose_fused_kernel,
        out_shape=jax.ShapeDtypeStruct((rows_pad, Kp_pad), jnp.bfloat16),
        grid_spec=pltpu.PrefetchScalarGridSpec(
            num_scalar_prefetch=0,
            grid=(n_tiles,),
            in_specs=[
                pl.BlockSpec((tm, Kpad), lambda i: (i, 0)),     # patch rows
                pl.BlockSpec((Kpad, C1), lambda i: (0, 0)),     # W1 (resident)
                pl.BlockSpec((1, C1), lambda i: (0, 0)),        # b1
                pl.BlockSpec((C1, C2), lambda i: (0, 0)),       # W2
                pl.BlockSpec((1, C2), lambda i: (0, 0)),        # b2
                pl.BlockSpec((C2, Kp_pad), lambda i: (0, 0)),   # W3 (lane-padded)
                pl.BlockSpec((1, Kp_pad), lambda i: (0, 0)),    # b3 (lane-padded)
            ],
            out_specs=pl.BlockSpec((tm, Kp_pad), lambda i: (i, 0)),
        ),
        compiler_params=pltpu.CompilerParams(
            dimension_semantics=("parallel",),
            vmem_limit_bytes=32 * 1024 * 1024),
    )(patches, w1p, b1, w2b, b2, w3p, b3p)

    # --- glue: drop padded rows/lanes, back to f32 NCHW heatmaps ---
    out = out_flat[:rows, :Kp].astype(jnp.float32).reshape(B, H, W, Kp)
    return jnp.transpose(out, (0, 3, 1, 2))


# ----------------------------- parameter init --------------------------------

def init_params(key, cin, c1, c2, num_keypoints):
    k1, k2, k3 = jax.random.split(key, 3)
    # Backbone 3x3 conv weights stored as (kh*kw*cin, c1), channel fastest, matching the
    # wrapper's patch concat order.  NOTE: real PyTorch Conv2d weights (Cout,Cin,kh,kw)
    # must be permute(2,3,1,0).reshape(9*Cin, C1) before use.
    w1 = jax.random.normal(k1, (3 * 3 * cin, c1), jnp.float32) * 0.1
    b1 = jnp.zeros((1, c1), jnp.float32)
    # neck 1x1 conv
    w2 = jax.random.normal(k2, (c1, c2), jnp.float32) * 0.1
    b2 = jnp.zeros((1, c2), jnp.float32)
    # head 1x1 conv -> keypoint heatmaps
    w3 = jax.random.normal(k3, (c2, num_keypoints), jnp.float32) * 0.1
    b3 = jnp.zeros((1, num_keypoints), jnp.float32)
    return (w1, b1, w2, b2, w3, b3)


# ----------------------------- reference (pure JAX, bf16-matched) -------------

def reference_forward(x_nchw, params):
    w1, b1, w2, b2, w3, b3 = params
    B, Cin, H, W = x_nchw.shape
    x = jnp.transpose(x_nchw, (0, 2, 3, 1))
    xp = jnp.pad(x, ((0, 0), (1, 1), (1, 1), (0, 0)))
    patches = jnp.concatenate(
        [xp[:, i:i + H, j:j + W, :] for i in range(3) for j in range(3)],
        axis=-1).reshape(B * H * W, -1)
    h1 = jnp.maximum(
        jnp.dot(patches.astype(jnp.bfloat16), w1.astype(jnp.bfloat16),
                preferred_element_type=jnp.float32) + b1, 0.0)
    h2 = jnp.maximum(
        jnp.dot(h1.astype(jnp.bfloat16), w2.astype(jnp.bfloat16),
                preferred_element_type=jnp.float32) + b2, 0.0)
    out = jnp.dot(h2.astype(jnp.bfloat16), w3.astype(jnp.bfloat16),
                  preferred_element_type=jnp.float32) + b3
    return jnp.transpose(out.reshape(B, H, W, -1), (0, 3, 1, 2))


# ----------------------------- main -------------------------------------------

if __name__ == "__main__":
    B, Cin, H, W = 2, 4, 16, 16
    C1, C2, NUM_KPTS = 32, 32, 17

    key = jax.random.PRNGKey(0)
    x_key, p_key = jax.random.split(key)
    x = jax.random.normal(x_key, (B, Cin, H, W), jnp.float32)
    params = init_params(p_key, Cin, C1, C2, NUM_KPTS)

    out = pose_estimation_forward(x, params)
    out = jax.block_until_ready(out)

    ref = reference_forward(x, params)
    assert out.shape == (B, NUM_KPTS, H, W), out.shape
    assert jnp.allclose(out, ref, atol=1e-2, rtol=1e-2), "mismatch vs reference"

    print("KERNEL_OK")
</pallas_src>

<mosaic_0001>
module attributes {stable_mosaic.version = 11 : i64} {
  func.func @pose_fused_kernel(%arg0: i32, %arg1: memref<256x128xbf16, #tpu.memory_space<vmem>>, %arg2: memref<128x32xbf16, #tpu.memory_space<vmem>>, %arg3: memref<1x32xf32, #tpu.memory_space<vmem>>, %arg4: memref<32x32xbf16, #tpu.memory_space<vmem>>, %arg5: memref<1x32xf32, #tpu.memory_space<vmem>>, %arg6: memref<32x128xbf16, #tpu.memory_space<vmem>>, %arg7: memref<1x128xf32, #tpu.memory_space<vmem>>, %arg8: memref<256x128xbf16, #tpu.memory_space<vmem>>) attributes {dimension_semantics = [#tpu.dimension_semantics<parallel>], iteration_bounds = array<i64: 2>, scalar_prefetch = 0 : i64, scratch_operands = 0 : i64, tpu.core_type = #tpu.core_type<tc>, window_params = [{transform_indices = @transform_0, window_bounds = array<i64: 256, 128>}, {pipeline_mode = #tpu.pipeline_mode<synchronous>, transform_indices = @transform_1, window_bounds = array<i64: 128, 32>}, {pipeline_mode = #tpu.pipeline_mode<synchronous>, transform_indices = @transform_2, window_bounds = array<i64: 1, 32>}, {pipeline_mode = #tpu.pipeline_mode<synchronous>, transform_indices = @transform_3, window_bounds = array<i64: 32, 32>}, {pipeline_mode = #tpu.pipeline_mode<synchronous>, transform_indices = @transform_4, window_bounds = array<i64: 1, 32>}, {pipeline_mode = #tpu.pipeline_mode<synchronous>, transform_indices = @transform_5, window_bounds = array<i64: 32, 128>}, {pipeline_mode = #tpu.pipeline_mode<synchronous>, transform_indices = @transform_6, window_bounds = array<i64: 1, 128>}, {transform_indices = @transform_7, window_bounds = array<i64: 256, 128>}]} {
    %c0 = arith.constant 0 : index
    %c0_0 = arith.constant 0 : index
    %0 = vector.load %arg1[%c0, %c0_0] : memref<256x128xbf16, #tpu.memory_space<vmem>>, vector<256x128xbf16>
    %c0_1 = arith.constant 0 : index
    %c0_2 = arith.constant 0 : index
    %1 = vector.load %arg2[%c0_1, %c0_2] : memref<128x32xbf16, #tpu.memory_space<vmem>>, vector<128x32xbf16>
    %cst = arith.constant dense<0.000000e+00> : vector<256x32xf32>
    %2 = tpu.matmul %0, %1, %cst {dimension_numbers = #tpu.dot_dimension_numbers<[1], [0], [0], [1], [0, 0, 1, 1], [], []>} : vector<256x128xbf16>, vector<128x32xbf16>, vector<256x32xf32> -> vector<256x32xf32>
    %c0_3 = arith.constant 0 : index
    %c0_4 = arith.constant 0 : index
    %3 = vector.load %arg3[%c0_3, %c0_4] : memref<1x32xf32, #tpu.memory_space<vmem>>, vector<1x32xf32>
    %4 = vector.broadcast %3 : vector<1x32xf32> to vector<256x32xf32>
    %5 = arith.addf %2, %4 : vector<256x32xf32>
    %cst_5 = arith.constant 0.000000e+00 : f32
    %6 = vector.broadcast %cst_5 : f32 to vector<256x32xf32>
    %7 = arith.maximumf %5, %6 : vector<256x32xf32>
    %8 = arith.truncf %7 : vector<256x32xf32> to vector<256x32xbf16>
    %c0_6 = arith.constant 0 : index
    %c0_7 = arith.constant 0 : index
    %9 = vector.load %arg4[%c0_6, %c0_7] : memref<32x32xbf16, #tpu.memory_space<vmem>>, vector<32x32xbf16>
    %cst_8 = arith.constant dense<0.000000e+00> : vector<256x32xf32>
    %10 = tpu.matmul %8, %9, %cst_8 {dimension_numbers = #tpu.dot_dimension_numbers<[1], [0], [0], [1], [0, 0, 1, 1], [], []>} : vector<256x32xbf16>, vector<32x32xbf16>, vector<256x32xf32> -> vector<256x32xf32>
    %c0_9 = arith.constant 0 : index
    %c0_10 = arith.constant 0 : index
    %11 = vector.load %arg5[%c0_9, %c0_10] : memref<1x32xf32, #tpu.memory_space<vmem>>, vector<1x32xf32>
    %12 = vector.broadcast %11 : vector<1x32xf32> to vector<256x32xf32>
    %13 = arith.addf %10, %12 : vector<256x32xf32>
    %cst_11 = arith.constant 0.000000e+00 : f32
    %14 = vector.broadcast %cst_11 : f32 to vector<256x32xf32>
    %15 = arith.maximumf %13, %14 : vector<256x32xf32>
    %16 = arith.truncf %15 : vector<256x32xf32> to vector<256x32xbf16>
    %c0_12 = arith.constant 0 : index
    %c0_13 = arith.constant 0 : index
    %17 = vector.load %arg6[%c0_12, %c0_13] : memref<32x128xbf16, #tpu.memory_space<vmem>>, vector<32x128xbf16>
    %cst_14 = arith.constant dense<0.000000e+00> : vector<256x128xf32>
    %18 = tpu.matmul %16, %17, %cst_14 {dimension_numbers = #tpu.dot_dimension_numbers<[1], [0], [0], [1], [0, 0, 1, 1], [], []>} : vector<256x32xbf16>, vector<32x128xbf16>, vector<256x128xf32> -> vector<256x128xf32>
    %c0_15 = arith.constant 0 : index
    %c0_16 = arith.constant 0 : index
    %19 = vector.load %arg7[%c0_15, %c0_16] : memref<1x128xf32, #tpu.memory_space<vmem>>, vector<1x128xf32>
    %20 = vector.broadcast %19 : vector<1x128xf32> to vector<256x128xf32>
    %21 = arith.addf %18, %20 : vector<256x128xf32>
    %22 = arith.truncf %21 : vector<256x128xf32> to vector<256x128xbf16>
    %c0_17 = arith.constant 0 : index
    %c0_18 = arith.constant 0 : index
    %23 = vector.load %arg8[%c0_17, %c0_18] : memref<256x128xbf16, #tpu.memory_space<vmem>>, vector<256x128xbf16>
    tpu.vector_store %arg8[%c0_17, %c0_18], %22 {strides = array<i32>} : memref<256x128xbf16, #tpu.memory_space<vmem>>, vector<256x128xbf16>,
    return
  }
  func.func @transform_0(%arg0: i32) -> (i32, i32) {
    %c0_i32 = arith.constant 0 : i32
    %c0_i32_0 = arith.constant 0 : i32
    return %arg0, %c0_i32 : i32, i32
  }
  func.func @transform_1(%arg0: i32) -> (i32, i32) {
    %c0_i32 = arith.constant 0 : i32
    %c0_i32_0 = arith.constant 0 : i32
    %c0_i32_1 = arith.constant 0 : i32
    return %c0_i32, %c0_i32_0 : i32, i32
  }
  func.func @transform_2(%arg0: i32) -> (i32, i32) {
    %c0_i32 = arith.constant 0 : i32
    %c0_i32_0 = arith.constant 0 : i32
    %c0_i32_1 = arith.constant 0 : i32
    return %c0_i32, %c0_i32_0 : i32, i32
  }
  func.func @transform_3(%arg0: i32) -> (i32, i32) {
    %c0_i32 = arith.constant 0 : i32
    %c0_i32_0 = arith.constant 0 : i32
    %c0_i32_1 = arith.constant 0 : i32
    return %c0_i32, %c0_i32_0 : i32, i32
  }
  func.func @transform_4(%arg0: i32) -> (i32, i32) {
    %c0_i32 = arith.constant 0 : i32
    %c0_i32_0 = arith.constant 0 : i32
    %c0_i32_1 = arith.constant 0 : i32
    return %c0_i32, %c0_i32_0 : i32, i32
  }
  func.func @transform_5(%arg0: i32) -> (i32, i32) {
    %c0_i32 = arith.constant 0 : i32
    %c0_i32_0 = arith.constant 0 : i32
    %c0_i32_1 = arith.constant 0 : i32
    return %c0_i32, %c0_i32_0 : i32, i32
  }
  func.func @transform_6(%arg0: i32) -> (i32, i32) {
    %c0_i32 = arith.constant 0 : i32
    %c0_i32_0 = arith.constant 0 : i32
    %c0_i32_1 = arith.constant 0 : i32
    return %c0_i32, %c0_i32_0 : i32, i32
  }
  func.func @transform_7(%arg0: i32) -> (i32, i32) {
    %c0_i32 = arith.constant 0 : i32
    %c0_i32_0 = arith.constant 0 : i32
    return %arg0, %c0_i32 : i32, i32
  }
}

</mosaic_0001>

<bundles_post_ra>
// kernel: tpu_custom_call.1
= control target key start
LH: loop header
LB: loop body
LE: loop exit
PB: predicated region body
PF: predicated region fallthrough
CT: control target
= control target key end

     0   :  { %12 = vsyncpa [#allocation3], 0  ;;  %s2494_s0 = inlined_call_operand.hbm [shape: bf16[512,128], index: 0, kind: input, shape index: {}]   ;;  %s2495_s1 = inlined_call_operand.vmem [shape: bf16[128,32], index: 1, kind: input, shape index: {}]   ;;  %s2496_s2 = inlined_call_operand.vmem [shape: f32[1,32], index: 2, kind: input, shape index: {}]   ;;  %s2497_s3 = inlined_call_operand.vmem [shape: bf16[32,32], index: 3, kind: input, shape index: {}]   ;;  %s2498_s4 = inlined_call_operand.vmem [shape: f32[1,32], index: 4, kind: input, shape index: {}]   ;;  %s2499_s5 = inlined_call_operand.vmem [shape: bf16[32,128], index: 5, kind: input, shape index: {}]   ;;  %s2500_s6 = inlined_call_operand.vmem [shape: f32[1,128], index: 6, kind: input, shape index: {}]   ;;  %s2501_s7 = inlined_call_operand.hbm [shape: bf16[512,128], index: 7, kind: output, shape index: {}]  }
   0x1   :  { %14 = vsyncpa [#allocation3 + $0x1], 0 }
   0x2   :  { %15 = vsyncpa [#allocation4], 0 }
   0x3   :  { %17 = vsyncpa [#allocation4 + $0x1], 0  ;;  %s2112_s24 = smov 0   ;;  %s2114_s25 = smov 0  }
   0x4   :  { %s2116_s26 = smov 0   ;;  %s2118_s27 = smov 0  }
   0x5 LB: > { %s2133_s28 = sadd.s32 4294967295, %s2064_s27   ;;  %s1468_s29 = sadd.s32 4294967294, %s2064_s27   ;;  %s2064_s27 = sphi %s2118_s27, %s2514_s27   ;;  %s2060_s26 = sphi %s2116_s26, %s2513_s26   ;;  %s2056_s25 = sphi %s2114_s25, %s2512_s25   ;;  %s2052_s24 = sphi %s2112_s24, %s2511_s24  }
   0x6   : > { %s2137_s30 = sadd.s32 1, %s2064_s27   ;;  %s30_s8 = sadd.s32 1, %s2060_s26 }
   0x7   : > { %s27_s9 = ssub.s32 %s2064_s27, %s2137_s30  ;;  %p37_p0 = scmp.ne.s32.totalorder %s2060_s26, %s2056_s25 }
   0x8   : > { %p28_p1 = scmp.eq.s32.totalorder %s27_s9, 0  ;;  %p38_p2 = scmp.eq.s32.totalorder %s2064_s27, 0 }
   0x9   : > { %p43_p3 = scmp.ne.s32.totalorder %s2056_s25, %s2052_s24  ;;  %p44_p4 = scmp.eq.s32.totalorder %s2133_s28, 0 }
   0xa   : > { %s2149_s10 = scalar_select %p28_p1, %s2060_s26, %s30_s8  }
   0xb   : > { %p2151_p5 = por %p38_p2, %p37_p0  ;;  %p2155_p6 = por %p44_p4, %p43_p3 }
   0xc   : > { %p193_p7 = scmp.eq.s32.totalorder %s2133_s28, 1  ;;  %p199_p8 = scmp.eq.s32.totalorder %s1468_s29, 1 }
   0xd   : > { %p1902_p10 = scmp.lt.s32.totalorder %s2064_s27, 2  ;;  %s237_s15 = sand.u32 1, %s2060_s26  }
   0xe   : > { %p2162_p11 = por %p193_p7, %p37_p0  ;;  %p2166_p12 = por %p199_p8, %p43_p3 }
   0xf   : > { %s1577_s16 = sshll.u32 %s2064_s27, 11  ;;  %s1471_s17 = sshll.u32 %s237_s15, 7 }
  0x10   : > { %s2505_s13 = scalar_select %p2162_p11, 1, 0 }
  0x11   : > { %s2506_s14 = scalar_select %p2166_p12, 1, 0 }
  0x12   : > { %s2175_s20 = scalar_lea.hbm %s2494_s0, %s1577_s16  ;;  %s241_s21 = scalar_lea.vmem [#allocation2], %s1471_s17 }
  0x13   : > { %s248_s22 = sshll.u32 %s241_s21, 4  ;;  %p2179_p13 = pnand %p1902_p10, %p2151_p5  ;;  %s2183_s22 = int_to_ptr.vmem [resolvable:$true] %s248_s22 }
  0x14   : > { %s2185_s29 = scalar_lea.sflag [#allocation3], %s237_s15  ;;  %s1968_s8 = scalar_lea.hbm %s2175_s20, 2048 }
  0x15   : > { %p1969_p0 = scmp.ne.s32.totalorder %s2175_s20, %s1968_s8  ;;  %p1970_p1 = pneg %p2179_p13 }
  0x16   : > { %s1973_s16 = scalar_lea.hbm %s2494_s0, 4096  ;;  %p1974_p4 = scmp.lt.u32.totalorder %s2175_s20, %s2494_s0 }
  0x17   : > { %p1971_p2 = pnand %p1970_p1, %p1969_p0  ;;  %p1975_p5 = scmp.lt.u32.totalorder %s1973_s16, %s1968_s8 }
  0x18   : > { %p1977_p8 = scmp.lt.u32.totalorder %s1968_s8, %s2175_s20 }
  0x19   : > { %p1972_p3 = pneg %p1971_p2  ;;  %p1976_p7 = por %p1975_p5, %p1974_p4 }
  0x1b   : > { %p1978_p10 = por %p1977_p8, %p1976_p7 }
  0x1d   : > { %p1979_p9 = pnand %p1978_p10, %p1972_p3 }
  0x1f   : > { %1982 = shalt.err (!%p1979_p9)
}
  0x20   : > { %s1983_s15 = scalar_lea.vmem %s2183_s22, 2048  ;;  %s2066_s19 = smov [#allocation2]  }
  0x21   : > { %p1984_p0 = scmp.ne.s32.totalorder %s2183_s22, %s1983_s15  ;;  %s1988_s21 = sshll.u32 %s2066_s19, 4  ;;  %s1989_s21 = int_to_ptr.vmem [resolvable:$false] %s1988_s21 }
  0x22   : > { %s1990_s9 = scalar_lea.vmem %s1989_s21, 4096  ;;  %p1991_p11 = scmp.lt.s32.totalorder %s2183_s22, %s1989_s21 }
  0x23   : > { %p1986_p2 = pnand %p1984_p0, %p1970_p1  ;;  %p1992_p4 = scmp.lt.s32.totalorder %s1990_s9, %s1983_s15 }
  0x25   : > { %p1987_p12 = pneg %p1986_p2  ;;  %p1993_p5 = por %p1992_p4, %p1991_p11 }
  0x27   : > { %p1994_p7 = pnand %p1993_p5, %p1987_p12 }
  0x29   : > { %1997 = shalt.err (!%p1994_p7)
}
  0x2a   : > { %s2067_s8 = smov 64   ;;  %s2068_s11 = smov 4  }
  0x2b   : > { %1897 = dma.hbm_to_vmem [thread:$0]  (!%p2179_p13), %s2175_s20, 2048, %s2183_s22, %s2185_s29, %s2067_s8, %s2067_s8, %s2068_s11  }
  0x2c   : > { %p1474_p9 = scmp.ge.s32.totalorder %s2064_s27, 1  ;;  %p256_p1 = scmp.lt.s32.totalorder %s2064_s27, 3 }
  0x2e   : > { %p257_p3 = pnand %p1474_p9, %p256_p1 }
  0x2f   : > { %s2216_s16 = sand.u32 (!%p257_p3), 1, %s2056_s25  }
  0x30   : > { %260 = sbr.rel (%p257_p3) target bundleno = 823 (0x337), region = 48  ;;  %s1475_s17 = sshll.u32 (!%p257_p3), %s2216_s16, 7 }
  0x31   : > { %s263_s18 = scalar_lea.sflag (!%p257_p3), [#allocation3], %s2216_s16  ;;  %s2222_s15 = scalar_lea.vmem (!%p257_p3), [#allocation2], %s1475_s17 }
  0x37   : > { %2043 = dma.done.wait (%p2155_p6), %s263_s18, 2048  }
  0x38   : > { %2045 = vsyncadd (%p2155_p6), %s263_s18, 4294965248  ;;  %v1940_v0 = vld [vmem:[%s2495_s1] sm:$0xff]   ;;  %v1941_v1 = vld [vmem:[%s2495_s1 + $0x8] sm:$0xff]   ;;  %vm731_vm0 = vcmask 261120   ;;  %s2397_s12 = scalar_lea.vmem [#allocation5], %s1475_s17  ;;  %s1610_s17 = sshll.u32 %s2133_s28, 11 }
  0x39   : > { %1766 = vmatprep.subr.bf16.mxu0 %v1940_v0  ;;  %v1942_v2 = vld [vmem:[%s2495_s1 + $0x10] sm:$0xff]   ;;  %v1943_v3 = vld [vmem:[%s2495_s1 + $0x18] sm:$0xff]   ;;  %v1948_v4 = vld [vmem:[%s2222_s15] sm:$0xff]   ;;  %s1395_s8 = sshll.u32 %s2397_s12, 4  ;;  %s2446_s20 = scalar_lea.hbm %s2501_s7, %s1610_s17  ;;  %s2448_s8 = int_to_ptr.vmem [resolvable:$true] %s1395_s8 }
  0x3a   : > { %1767 = vmatpush3.bf16.msra.mxu0 %v1940_v0  ;;  %1782 = vmatprep.mubr.bf16.mxu0 %v1948_v4  ;;  %v1944_v5 = vld [vmem:[%s2495_s1 + $0x20] sm:$0xff]   ;;  %v1945_v6 = vld [vmem:[%s2495_s1 + $0x28] sm:$0xff]   ;;  %v1946_v7 = vld [vmem:[%s2495_s1 + $0x30] sm:$0xff]   ;;  %s1382_s28 = scalar_lea.sflag [#allocation4], %s2216_s16  ;;  %s1998_s22 = scalar_lea.vmem %s2448_s8, 2048 }
  0x3b   : > { %1768 = vmatprep.subr.bf16.mxu0 %v1941_v1  ;;  %v1947_v8 = vld [vmem:[%s2495_s1 + $0x38] sm:$0xff]   ;;  %v1964_v9 = vld [vmem:[%s2497_s3] sm:$0xff]   ;;  %v1965_v10 = vld [vmem:[%s2497_s3 + $0x8] sm:$0xff]   ;;  %p1999_p6 = scmp.ne.s32.totalorder %s2448_s8, %s1998_s22  ;;  %p2508_p11 = scmp.ne.s32.totalorder %s2505_s13, 0 }
  0x3c   : > { %1886 = vmatprep.subr.bf16.mxu1 %v1964_v9  ;;  %v1949_v11 = vld [vmem:[%s2222_s15 + $0x8] sm:$0xff]   ;;  %v1950_v12 = vld [vmem:[%s2222_s15 + $0x10] sm:$0xff]   ;;  %v1951_v13 = vld [vmem:[%s2222_s15 + $0x18] sm:$0xff]  }
  0x3d   : > { %1888 = vmatpush3.bf16.msra.mxu1 %v1964_v9  ;;  %v1952_v14 = vld [vmem:[%s2222_s15 + $0x20] sm:$0xff]   ;;  %v1953_v15 = vld [vmem:[%s2222_s15 + $0x28] sm:$0xff]   ;;  %v1954_v16 = vld [vmem:[%s2222_s15 + $0x30] sm:$0xff]   ;;  %p2000_p12 = pnand %p1999_p6, %p2508_p11 }
  0x3e   : > { %1769 = vmatpush3.bf16.msra.mxu0 %v1941_v1  ;;  %1887 = vmatprep.subr.bf16.mxu1 %v1965_v10  ;;  %v1955_v17 = vld [vmem:[%s2222_s15 + $0x38] sm:$0xff]   ;;  %v1956_v18 = vld [vmem:[%s2222_s15 + $0x40] sm:$0xff]   ;;  %v1957_v19 = vld [vmem:[%s2222_s15 + $0x48] sm:$0xff]  }
  0x3f   : > { %1770 = vmatprep.subr.bf16.mxu0 %v1942_v2  ;;  %v1958_v20 = vld [vmem:[%s2222_s15 + $0x50] sm:$0xff]   ;;  %v1959_v21 = vld [vmem:[%s2222_s15 + $0x58] sm:$0xff]   ;;  %v1960_v22 = vld [vmem:[%s2222_s15 + $0x60] sm:$0xff]   ;;  %p2001_p13 = pneg %p2000_p12 }
  0x40   : > { %v1961_v23 = vld [vmem:[%s2222_s15 + $0x68] sm:$0xff]   ;;  %v1962_v24 = vld [vmem:[%s2222_s15 + $0x70] sm:$0xff]   ;;  %v1963_v25 = vld [vmem:[%s2222_s15 + $0x78] sm:$0xff]   ;;  %s2069_s15 = smov [#allocation5]  }
  0x41   : > { %1889 = vmatpush3.bf16.msra.mxu1 %v1965_v10  ;;  %v1966_v26 = vld [vmem:[%s2499_s5] sm:$0xff]   ;;  %s2002_s23 = sshll.u32 %s2069_s15, 4  ;;  %s2003_s23 = int_to_ptr.vmem [resolvable:$false] %s2002_s23 }
  0x42   : > { %1771 = vmatpush3.bf16.msra.mxu0 %v1942_v2  ;;  %1850 = vmatprep.subr.bf16.mxu1 %v1966_v26  ;;  %v2280_v27 = vld [vmem:[%s2496_s2] ss:$0 sm:$0xff]  ;;  %s2004_s29 = scalar_lea.vmem %s2003_s23, 4096  ;;  %p2005_p8 = scmp.lt.s32.totalorder %s2448_s8, %s2003_s23 }
  0x43   : > { %1772 = vmatprep.subr.bf16.mxu0 %v1943_v3  ;;  %p2006_p10 = scmp.lt.s32.totalorder %s2004_s29, %s1998_s22 }
  0x45   : > { %p2007_p0 = por %p2006_p10, %p2005_p8 }
  0x46   : > { %1773 = vmatpush3.bf16.msra.mxu0 %v1943_v3 }
  0x47   : > { %1774 = vmatprep.subr.bf16.mxu0 %v1944_v5  ;;  %p2008_p2 = pnand %p2007_p0, %p2001_p13 }
  0x4a   : > { %1775 = vmatpush3.bf16.msra.mxu0 %v1944_v5 }
  0x4b   : > { %1776 = vmatprep.subr.bf16.mxu0 %v1945_v6 }
  0x4e   : > { %1777 = vmatpush3.bf16.msra.mxu0 %v1945_v6 }
  0x4f   : > { %1778 = vmatprep.subr.bf16.mxu0 %v1946_v7 }
  0x52   : > { %1779 = vmatpush3.bf16.msra.mxu0 %v1946_v7 }
  0x53   : > { %1780 = vmatprep.subr.bf16.mxu0 %v1947_v8 }
  0x56   : > { %1781 = vmatpush3.bf16.msra.mxu0 %v1947_v8 }
  0x57   : > { %1814 = vmatprep.subr.bf16.mxu0 %v1964_v9 }
  0x59   : > { %1783 = vmatmul.mubr.bf16.vlgmr.msra.gmra.mrb[0].mxu0 %v1949_v11 }
  0x5a   : > { %1786 = vmatprep.mubr.bf16.mxu0 %v1950_v12  ;;  %1815 = vmatpush3.bf16.msra.mxu0 %v1964_v9  ;;  %v1967_v9 = vld [vmem:[%s2499_s5 + $0x8] sm:$0xff]  }
  0x5b   : > { %1816 = vmatprep.subr.bf16.mxu0 %v1965_v10 }
  0x5e   : > { %1817 = vmatpush3.bf16.msra.mxu0 %v1965_v10 }
  0x61   : > { %1787 = vmatmul.mubr.bf16.gmra.mrb[4].mxu0 %v1951_v13 }
  0x62   : > { %1790 = vmatprep.mubr.bf16.mxu0 %v1952_v14 }
  0x69   : > { %1791 = vmatmul.mubr.bf16.gmra.mrb[8].mxu0 %v1953_v15 }
  0x6a   : > { %1794 = vmatprep.mubr.bf16.mxu0 %v1954_v16 }
  0x71   : > { %1795 = vmatmul.mubr.bf16.gmra.mrb[12].mxu0 %v1955_v17 }
  0x72   : > { %1798 = vmatprep.mubr.bf16.mxu0 %v1956_v18 }
  0x79   : > { %1799 = vmatmul.mubr.bf16.gmra.mrb[16].mxu0 %v1957_v19 }
  0x7a   : > { %1802 = vmatprep.mubr.bf16.mxu0 %v1958_v20 }
  0x81   : > { %1803 = vmatmul.mubr.bf16.gmra.mrb[20].mxu0 %v1959_v21 }
  0x82   : > { %1806 = vmatprep.mubr.bf16.mxu0 %v1960_v22 }
  0x89   : > { %1807 = vmatmul.mubr.bf16.gmra.mrb[24].mxu0 %v1961_v23 }
  0x8a   : > { %1810 = vmatprep.mubr.bf16.mxu0 %v1962_v24 }
  0x91   : > { %1811 = vmatmul.mubr.bf16.gmra.mrb[28].mxu0 %v1963_v25 }
 0x12c   : > { %v1784_v28 = vpop.f32.mrb[0].mxu0 }
 0x12d   : > { %v542_v29 = vadd.f32 %v1784_v28, %v2280_v27  ;;  %v533_v30 = vpop.f32.mrb[1].mxu0 }
 0x12e   : > { %v534_v31 = vadd.f32 %v2280_v27, %v533_v30  ;;  %v1785_v32 = vpop.f32.mrb[2].mxu0 }
 0x12f   : > { %v545_v33 = vadd.f32 %v1785_v32, %v2280_v27  ;;  %v536_v34 = vpop.f32.mrb[3].mxu0  ;;  %v662_v36 = vmax.f32 %v542_v29, 0.0 }
 0x130   : > { %v537_v35 = vadd.f32 %v2280_v27, %v536_v34  ;;  %v660_v38 = vmax.f32 %v534_v31, 0.0 }
 0x131   : > { %v663_v37 = vmax.f32 %v545_v33, 0.0 }
 0x132   : > { %v661_v39 = vmax.f32 %v537_v35, 0.0 }
 0x133   : > { %v693_v40 = vpack.c.bf16 %v663_v37, %v662_v36 }
 0x134   : > { %v692_v41 = vpack.c.bf16 %v661_v39, %v660_v38  ;;  %v1788_v42 = vpop.f32.mrb[4].mxu0 }
 0x135   : > { %v558_v43 = vadd.f32 %v1788_v42, %v2280_v27  ;;  %v549_v44 = vpop.f32.mrb[5].mxu0 }
 0x136   : > { %v550_v45 = vadd.f32 %v2280_v27, %v549_v44  ;;  %v1789_v46 = vpop.f32.mrb[6].mxu0  ;;  %1818 = vmatprep.mubr.msk.bf16.mxu0 %vm731_vm0, %v692_v41 }
 0x137   : > { %v561_v47 = vadd.f32 %v1789_v46, %v2280_v27  ;;  %v552_v48 = vpop.f32.mrb[7].mxu0  ;;  %1819 = vmatmul.mubr.msk.bf16.vlgmr.msra.gmra.mrb[32].mxu0 %vm731_vm0, %v693_v40  ;;  %v666_v50 = vmax.f32 %v558_v43, 0.0 }
 0x138   : > { %v553_v49 = vadd.f32 %v2280_v27, %v552_v48  ;;  %v664_v52 = vmax.f32 %v550_v45, 0.0 }
 0x139   : > { %v667_v51 = vmax.f32 %v561_v47, 0.0 }
 0x13a   : > { %v665_v53 = vmax.f32 %v553_v49, 0.0 }
 0x13b   : > { %v695_v54 = vpack.c.bf16 %v667_v51, %v666_v50 }
 0x13c   : > { %v694_v55 = vpack.c.bf16 %v665_v53, %v664_v52  ;;  %v1792_v56 = vpop.f32.mrb[8].mxu0 }
 0x13d   : > { %v574_v57 = vadd.f32 %v1792_v56, %v2280_v27  ;;  %v565_v58 = vpop.f32.mrb[9].mxu0 }
 0x13e   : > { %v566_v59 = vadd.f32 %v2280_v27, %v565_v58  ;;  %v1793_v60 = vpop.f32.mrb[10].mxu0  ;;  %1822 = vmatprep.mubr.msk.bf16.mxu0 %vm731_vm0, %v694_v55 }
 0x13f   : > { %v577_v61 = vadd.f32 %v1793_v60, %v2280_v27  ;;  %v568_v62 = vpop.f32.mrb[11].mxu0  ;;  %1823 = vmatmul.mubr.msk.bf16.gmra.mrb[36].mxu0 %vm731_vm0, %v695_v54  ;;  %v670_v0 = vmax.f32 %v574_v57, 0.0 }
 0x140   : > { %v569_v63 = vadd.f32 %v2280_v27, %v568_v62  ;;  %v668_v2 = vmax.f32 %v566_v59, 0.0 }
 0x141   : > { %v671_v1 = vmax.f32 %v577_v61, 0.0 }
 0x142   : > { %v669_v3 = vmax.f32 %v569_v63, 0.0 }
 0x143   : > { %v697_v4 = vpack.c.bf16 %v671_v1, %v670_v0 }
 0x144   : > { %v1796_v5 = vpop.f32.mrb[12].mxu0  ;;  %v696_v6 = vpack.c.bf16 %v669_v3, %v668_v2 }
 0x145   : > { %v590_v7 = vadd.f32 %v1796_v5, %v2280_v27  ;;  %v581_v8 = vpop.f32.mrb[13].mxu0 }
 0x146   : > { %v582_v10 = vadd.f32 %v2280_v27, %v581_v8  ;;  %v1797_v11 = vpop.f32.mrb[14].mxu0  ;;  %1826 = vmatprep.mubr.msk.bf16.mxu1 %vm731_vm0, %v696_v6 }
 0x147   : > { %v593_v12 = vadd.f32 %v1797_v11, %v2280_v27  ;;  %v584_v13 = vpop.f32.mrb[15].mxu0  ;;  %1827 = vmatmul.mubr.msk.bf16.vlgmr.msra.gmra.mrb[0].mxu1 %vm731_vm0, %v697_v4  ;;  %v674_v15 = vmax.f32 %v590_v7, 0.0 }
 0x148   : > { %v585_v14 = vadd.f32 %v2280_v27, %v584_v13  ;;  %1851 = vmatpush3.bf16.msra.mxu1 %v1966_v26  ;;  %v672_v17 = vmax.f32 %v582_v10, 0.0 }
 0x149   : > { %v675_v16 = vmax.f32 %v593_v12, 0.0  ;;  %1852 = vmatprep.subr.bf16.mxu1 %v1967_v9 }
 0x14a   : > { %v673_v18 = vmax.f32 %v585_v14, 0.0  ;;  %v2336_v14 = vld [vmem:[%s2498_s4] ss:$0 sm:$0xff] }
 0x14b   : > { %v699_v19 = vpack.c.bf16 %v675_v16, %v674_v15 }
 0x14c   : > { %v698_v20 = vpack.c.bf16 %v673_v18, %v672_v17  ;;  %v1800_v21 = vpop.f32.mrb[16].mxu0  ;;  %1853 = vmatpush3.bf16.msra.mxu1 %v1967_v9 }
 0x14d   : > { %v606_v22 = vadd.f32 %v1800_v21, %v2280_v27  ;;  %v597_v23 = vpop.f32.mrb[17].mxu0 }
 0x14e   : > { %v598_v24 = vadd.f32 %v2280_v27, %v597_v23  ;;  %v1801_v25 = vpop.f32.mrb[18].mxu0  ;;  %1830 = vmatprep.mubr.msk.bf16.mxu1 %vm731_vm0, %v698_v20 }
 0x14f   : > { %v609_v28 = vadd.f32 %v1801_v25, %v2280_v27  ;;  %v600_v26 = vpop.f32.mrb[19].mxu0  ;;  %1831 = vmatmul.mubr.msk.bf16.gmra.mrb[4].mxu1 %vm731_vm0, %v699_v19  ;;  %v678_v30 = vmax.f32 %v606_v22, 0.0 }
 0x150   : > { %v601_v29 = vadd.f32 %v2280_v27, %v600_v26  ;;  %v676_v32 = vmax.f32 %v598_v24, 0.0 }
 0x151   : > { %v679_v31 = vmax.f32 %v609_v28, 0.0 }
 0x152   : > { %v677_v33 = vmax.f32 %v601_v29, 0.0 }
 0x153   : > { %v701_v34 = vpack.c.bf16 %v679_v31, %v678_v30 }
 0x154   : > { %v700_v35 = vpack.c.bf16 %v677_v33, %v676_v32  ;;  %v1804_v36 = vpop.f32.mrb[20].mxu0 }
 0x155   : > { %v622_v37 = vadd.f32 %v1804_v36, %v2280_v27  ;;  %v613_v38 = vpop.f32.mrb[21].mxu0 }
 0x156   : > { %v614_v39 = vadd.f32 %v2280_v27, %v613_v38  ;;  %v1805_v40 = vpop.f32.mrb[22].mxu0  ;;  %1834 = vmatprep.mubr.msk.bf16.mxu1 %vm731_vm0, %v700_v35 }
 0x157   : > { %v625_v41 = vadd.f32 %v1805_v40, %v2280_v27  ;;  %v616_v42 = vpop.f32.mrb[23].mxu0  ;;  %1835 = vmatmul.mubr.msk.bf16.gmra.mrb[8].mxu1 %vm731_vm0, %v701_v34  ;;  %v682_v44 = vmax.f32 %v622_v37, 0.0 }
 0x158   : > { %v617_v43 = vadd.f32 %v2280_v27, %v616_v42  ;;  %v680_v46 = vmax.f32 %v614_v39, 0.0 }
 0x159   : > { %v683_v45 = vmax.f32 %v625_v41, 0.0 }
 0x15a   : > { %v681_v47 = vmax.f32 %v617_v43, 0.0 }
 0x15b   : > { %v703_v48 = vpack.c.bf16 %v683_v45, %v682_v44 }
 0x15c   : > { %v702_v49 = vpack.c.bf16 %v681_v47, %v680_v46  ;;  %v1808_v50 = vpop.f32.mrb[24].mxu0 }
 0x15d   : > { %v638_v51 = vadd.f32 %v1808_v50, %v2280_v27  ;;  %v629_v52 = vpop.f32.mrb[25].mxu0 }
 0x15e   : > { %v630_v53 = vadd.f32 %v2280_v27, %v629_v52  ;;  %v1809_v54 = vpop.f32.mrb[26].mxu0  ;;  %1838 = vmatprep.mubr.msk.bf16.mxu1 %vm731_vm0, %v702_v49 }
 0x15f   : > { %v641_v55 = vadd.f32 %v1809_v54, %v2280_v27  ;;  %v632_v56 = vpop.f32.mrb[27].mxu0  ;;  %1839 = vmatmul.mubr.msk.bf16.gmra.mrb[12].mxu1 %vm731_vm0, %v703_v48  ;;  %v686_v58 = vmax.f32 %v638_v51, 0.0 }
 0x160   : > { %v633_v57 = vadd.f32 %v2280_v27, %v632_v56  ;;  %v684_v60 = vmax.f32 %v630_v53, 0.0 }
 0x161   : > { %v687_v59 = vmax.f32 %v641_v55, 0.0 }
 0x162   : > { %v685_v61 = vmax.f32 %v633_v57, 0.0 }
 0x163   : > { %v705_v62 = vpack.c.bf16 %v687_v59, %v686_v58 }
 0x164   : > { %v704_v63 = vpack.c.bf16 %v685_v61, %v684_v60  ;;  %v1812_v0 = vpop.f32.mrb[28].mxu0 }
 0x165   : > { %v654_v1 = vadd.f32 %v1812_v0, %v2280_v27  ;;  %v645_v2 = vpop.f32.mrb[29].mxu0 }
 0x166   : > { %v646_v3 = vadd.f32 %v2280_v27, %v645_v2  ;;  %v1813_v4 = vpop.f32.mrb[30].mxu0  ;;  %1842 = vmatprep.mubr.msk.bf16.mxu1 %vm731_vm0, %v704_v63 }
 0x167   : > { %v657_v5 = vadd.f32 %v1813_v4, %v2280_v27  ;;  %v648_v6 = vpop.f32.mrb[31].mxu0  ;;  %1843 = vmatmul.mubr.msk.bf16.gmra.mrb[16].mxu1 %vm731_vm0, %v705_v62  ;;  %v690_v8 = vmax.f32 %v654_v1, 0.0 }
 0x168   : > { %v649_v7 = vadd.f32 %v2280_v27, %v648_v6  ;;  %v688_v10 = vmax.f32 %v646_v3, 0.0 }
 0x169   : > { %v691_v9 = vmax.f32 %v657_v5, 0.0 }
 0x16a   : > { %v689_v11 = vmax.f32 %v649_v7, 0.0 }
 0x16b   : > { %v707_v12 = vpack.c.bf16 %v691_v9, %v690_v8 }
 0x16c   : > { %v706_v13 = vpack.c.bf16 %v689_v11, %v688_v10 }
 0x16e   : > { %1846 = vmatprep.mubr.msk.bf16.mxu1 %vm731_vm0, %v706_v13 }
 0x16f   : > { %1847 = vmatmul.mubr.msk.bf16.gmra.mrb[20].mxu1 %vm731_vm0, %v707_v12 }
 0x20a   : > { %v1820_v15 = vpop.f32.mrb[32].mxu0 }
 0x20b   : > { %v823_v16 = vadd.f32 %v1820_v15, %v2336_v14  ;;  %v814_v17 = vpop.f32.mrb[33].mxu0 }
 0x20c   : > { %v815_v27 = vadd.f32 %v2336_v14, %v814_v17  ;;  %v1821_v18 = vpop.f32.mrb[34].mxu0 }
 0x20d   : > { %v826_v19 = vadd.f32 %v1821_v18, %v2336_v14  ;;  %v817_v20 = vpop.f32.mrb[35].mxu0  ;;  %v943_v22 = vmax.f32 %v823_v16, 0.0 }
 0x20e   : > { %v818_v21 = vadd.f32 %v2336_v14, %v817_v20  ;;  %v941_v24 = vmax.f32 %v815_v27, 0.0 }
 0x20f   : > { %v944_v23 = vmax.f32 %v826_v19, 0.0 }
 0x210   : > { %v942_v25 = vmax.f32 %v818_v21, 0.0 }
 0x211   : > { %v974_v28 = vpack.c.bf16 %v944_v23, %v943_v22 }
 0x212   : > { %v973_v26 = vpack.c.bf16 %v942_v25, %v941_v24  ;;  %v1824_v29 = vpop.f32.mrb[36].mxu0 }
 0x213   : > { %v839_v30 = vadd.f32 %v1824_v29, %v2336_v14  ;;  %v830_v31 = vpop.f32.mrb[37].mxu0 }
 0x214   : > { %v831_v32 = vadd.f32 %v2336_v14, %v830_v31  ;;  %v1825_v33 = vpop.f32.mrb[38].mxu0  ;;  %1854 = vmatprep.mubr.msk.bf16.mxu1 %vm731_vm0, %v973_v26 }
 0x215   : > { %v842_v34 = vadd.f32 %v1825_v33, %v2336_v14  ;;  %v833_v35 = vpop.f32.mrb[39].mxu0  ;;  %1855 = vmatmul.mubr.msk.bf16.vlgmr.msra.gmra.mrb[24].mxu1 %vm731_vm0, %v974_v28  ;;  %v947_v37 = vmax.f32 %v839_v30, 0.0 }
 0x216   : > { %v834_v36 = vadd.f32 %v2336_v14, %v833_v35  ;;  %v945_v39 = vmax.f32 %v831_v32, 0.0 }
 0x217   : > { %v948_v38 = vmax.f32 %v842_v34, 0.0 }
 0x218   : > { %v946_v40 = vmax.f32 %v834_v36, 0.0 }
 0x219   : > { %v976_v41 = vpack.c.bf16 %v948_v38, %v947_v37 }
 0x21a   : > { %v975_v42 = vpack.c.bf16 %v946_v40, %v945_v39  ;;  %v1828_v43 = vpop.f32.mrb[0].mxu1 }
 0x21b   : > { %v855_v44 = vadd.f32 %v1828_v43, %v2336_v14  ;;  %v846_v45 = vpop.f32.mrb[1].mxu1 }
 0x21c   : > { %v847_v46 = vadd.f32 %v2336_v14, %v846_v45  ;;  %v1829_v47 = vpop.f32.mrb[2].mxu1  ;;  %1858 = vmatprep.mubr.msk.bf16.mxu1 %vm731_vm0, %v975_v42 }
 0x21d   : > { %v858_v48 = vadd.f32 %v1829_v47, %v2336_v14  ;;  %v849_v49 = vpop.f32.mrb[3].mxu1  ;;  %1859 = vmatmul.mubr.msk.bf16.gmra.mrb[28].mxu1 %vm731_vm0, %v976_v41  ;;  %v951_v51 = vmax.f32 %v855_v44, 0.0 }
 0x21e   : > { %v850_v50 = vadd.f32 %v2336_v14, %v849_v49  ;;  %v949_v53 = vmax.f32 %v847_v46, 0.0 }
 0x21f   : > { %v952_v52 = vmax.f32 %v858_v48, 0.0 }
 0x220   : > { %v950_v54 = vmax.f32 %v850_v50, 0.0 }
 0x221   : > { %v978_v55 = vpack.c.bf16 %v952_v52, %v951_v51 }
 0x222   : > { %v977_v56 = vpack.c.bf16 %v950_v54, %v949_v53  ;;  %v1832_v57 = vpop.f32.mrb[4].mxu1 }
 0x223   : > { %v871_v58 = vadd.f32 %v1832_v57, %v2336_v14  ;;  %v862_v59 = vpop.f32.mrb[5].mxu1 }
 0x224   : > { %v863_v60 = vadd.f32 %v2336_v14, %v862_v59  ;;  %v1833_v61 = vpop.f32.mrb[6].mxu1  ;;  %1862 = vmatprep.mubr.msk.bf16.mxu1 %vm731_vm0, %v977_v56 }
 0x225   : > { %v874_v62 = vadd.f32 %v1833_v61, %v2336_v14  ;;  %v865_v63 = vpop.f32.mrb[7].mxu1  ;;  %1863 = vmatmul.mubr.msk.bf16.gmra.mrb[32].mxu1 %vm731_vm0, %v978_v55  ;;  %v955_v1 = vmax.f32 %v871_v58, 0.0 }
 0x226   : > { %v866_v0 = vadd.f32 %v2336_v14, %v865_v63  ;;  %v953_v3 = vmax.f32 %v863_v60, 0.0 }
 0x227   : > { %v956_v2 = vmax.f32 %v874_v62, 0.0 }
 0x228   : > { %v954_v4 = vmax.f32 %v866_v0, 0.0 }
 0x229   : > { %v980_v5 = vpack.c.bf16 %v956_v2, %v955_v1  ;;  %v2389_v1 = vld [vmem:[%s2500_s6] ss:$0 sm:$0xff] }
 0x22a   : > { %v979_v6 = vpack.c.bf16 %v954_v4, %v953_v3  ;;  %v1836_v7 = vpop.f32.mrb[8].mxu1 }
 0x22b   : > { %v887_v8 = vadd.f32 %v1836_v7, %v2336_v14  ;;  %v878_v9 = vpop.f32.mrb[9].mxu1 }
 0x22c   : > { %v879_v10 = vadd.f32 %v2336_v14, %v878_v9  ;;  %v1837_v11 = vpop.f32.mrb[10].mxu1  ;;  %1866 = vmatprep.mubr.msk.bf16.mxu1 %vm731_vm0, %v979_v6 }
 0x22d   : > { %v890_v12 = vadd.f32 %v1837_v11, %v2336_v14  ;;  %v881_v13 = vpop.f32.mrb[11].mxu1  ;;  %1867 = vmatmul.mubr.msk.bf16.gmra.mrb[36].mxu1 %vm731_vm0, %v980_v5  ;;  %v959_v16 = vmax.f32 %v887_v8, 0.0 }
 0x22e   : > { %v882_v15 = vadd.f32 %v2336_v14, %v881_v13  ;;  %v957_v27 = vmax.f32 %v879_v10, 0.0 }
 0x22f   : > { %v960_v17 = vmax.f32 %v890_v12, 0.0 }
 0x230   : > { %v958_v18 = vmax.f32 %v882_v15, 0.0 }
 0x231   : > { %v982_v19 = vpack.c.bf16 %v960_v17, %v959_v16 }
 0x232   : > { %v981_v20 = vpack.c.bf16 %v958_v18, %v957_v27  ;;  %v1840_v21 = vpop.f32.mrb[12].mxu1 }
 0x233   : > { %v903_v22 = vadd.f32 %v1840_v21, %v2336_v14  ;;  %v894_v23 = vpop.f32.mrb[13].mxu1 }
 0x234   : > { %v895_v24 = vadd.f32 %v2336_v14, %v894_v23  ;;  %v1841_v25 = vpop.f32.mrb[14].mxu1  ;;  %1870 = vmatprep.mubr.msk.bf16.mxu1 %vm731_vm0, %v981_v20 }
 0x235   : > { %v906_v28 = vadd.f32 %v1841_v25, %v2336_v14  ;;  %v897_v26 = vpop.f32.mrb[15].mxu1  ;;  %1871 = vmatmul.mubr.msk.bf16.gmra.mrb[40].mxu1 %vm731_vm0, %v982_v19  ;;  %v963_v30 = vmax.f32 %v903_v22, 0.0 }
 0x236   : > { %v898_v29 = vadd.f32 %v2336_v14, %v897_v26  ;;  %v961_v32 = vmax.f32 %v895_v24, 0.0 }
 0x237   : > { %v964_v31 = vmax.f32 %v906_v28, 0.0 }
 0x238   : > { %v962_v33 = vmax.f32 %v898_v29, 0.0 }
 0x239   : > { %v984_v34 = vpack.c.bf16 %v964_v31, %v963_v30 }
 0x23a   : > { %v983_v35 = vpack.c.bf16 %v962_v33, %v961_v32  ;;  %v1844_v36 = vpop.f32.mrb[16].mxu1 }
 0x23b   : > { %v919_v37 = vadd.f32 %v1844_v36, %v2336_v14  ;;  %v910_v38 = vpop.f32.mrb[17].mxu1 }
 0x23c   : > { %v911_v39 = vadd.f32 %v2336_v14, %v910_v38  ;;  %v1845_v40 = vpop.f32.mrb[18].mxu1  ;;  %1874 = vmatprep.mubr.msk.bf16.mxu1 %vm731_vm0, %v983_v35 }
 0x23d   : > { %v922_v41 = vadd.f32 %v1845_v40, %v2336_v14  ;;  %v913_v42 = vpop.f32.mrb[19].mxu1  ;;  %1875 = vmatmul.mubr.msk.bf16.gmra.mrb[44].mxu1 %vm731_vm0, %v984_v34  ;;  %v967_v44 = vmax.f32 %v919_v37, 0.0 }
 0x23e   : > { %v914_v43 = vadd.f32 %v2336_v14, %v913_v42  ;;  %v965_v46 = vmax.f32 %v911_v39, 0.0 }
 0x23f   : > { %v968_v45 = vmax.f32 %v922_v41, 0.0 }
 0x240   : > { %v966_v47 = vmax.f32 %v914_v43, 0.0 }
 0x241   : > { %v986_v48 = vpack.c.bf16 %v968_v45, %v967_v44 }
 0x242   : > { %v985_v49 = vpack.c.bf16 %v966_v47, %v965_v46  ;;  %v1848_v50 = vpop.f32.mrb[20].mxu1 }
 0x243   : > { %v935_v51 = vadd.f32 %v1848_v50, %v2336_v14  ;;  %v926_v52 = vpop.f32.mrb[21].mxu1 }
 0x244   : > { %v927_v53 = vadd.f32 %v2336_v14, %v926_v52  ;;  %v1849_v54 = vpop.f32.mrb[22].mxu1  ;;  %1878 = vmatprep.mubr.msk.bf16.mxu1 %vm731_vm0, %v985_v49 }
 0x245   : > { %v938_v55 = vadd.f32 %v1849_v54, %v2336_v14  ;;  %v929_v56 = vpop.f32.mrb[23].mxu1  ;;  %1879 = vmatmul.mubr.msk.bf16.gmra.mrb[48].mxu1 %vm731_vm0, %v986_v48  ;;  %v971_v58 = vmax.f32 %v935_v51, 0.0 }
 0x246   : > { %v930_v57 = vadd.f32 %v2336_v14, %v929_v56  ;;  %v969_v60 = vmax.f32 %v927_v53, 0.0 }
 0x247   : > { %v972_v59 = vmax.f32 %v938_v55, 0.0 }
 0x248   : > { %v970_v61 = vmax.f32 %v930_v57, 0.0 }
 0x249   : > { %v988_v62 = vpack.c.bf16 %v972_v59, %v971_v58 }
 0x24a   : > { %v987_v63 = vpack.c.bf16 %v970_v61, %v969_v60 }
 0x24c   : > { %1882 = vmatprep.mubr.msk.bf16.mxu1 %vm731_vm0, %v987_v63 }
 0x24d   : > { %1883 = vmatmul.mubr.msk.bf16.gmra.mrb[52].mxu1 %vm731_vm0, %v988_v62 }
 0x2e8   : > { %v1856_v0 = vpop.f32.mrb[24].mxu1 }
 0x2e9   : > { %v1094_v2 = vpop.f32.mrb[25].mxu1  ;;  %v1103_v14 = vadd.f32 %v1856_v0, %v2389_v1 }
 0x2ea   : > { %v1857_v3 = vpop.f32.mrb[26].mxu1  ;;  %v1095_v6 = vadd.f32 %v2389_v1, %v1094_v2 }
 0x2eb   : > { %v1106_v4 = vadd.f32 %v1857_v3, %v2389_v1  ;;  %v1097_v5 = vpop.f32.mrb[27].mxu1 }
 0x2ec   : > { %v1098_v7 = vadd.f32 %v2389_v1, %v1097_v5 }
 0x2ed   : > { %v1619_v8 = vpack.c.bf16 %v1106_v4, %v1103_v14 }
 0x2ee   : > { %v1614_v9 = vpack.c.bf16 %v1098_v7, %v1095_v6 }
 0x2ef   : > { %1691 = vst [vmem:[%s2397_s12 + $0x8] sm:$0xff] %v1619_v8  }
 0x2f0   : > { %1615 = vst [vmem:[%s2397_s12] sm:$0xff] %v1614_v9   ;;  %v1860_v10 = vpop.f32.mrb[28].mxu1 }
 0x2f1   : > { %v1110_v11 = vpop.f32.mrb[29].mxu1  ;;  %v1119_v13 = vadd.f32 %v1860_v10, %v2389_v1 }
 0x2f2   : > { %v1861_v12 = vpop.f32.mrb[30].mxu1  ;;  %v1111_v17 = vadd.f32 %v2389_v1, %v1110_v11 }
 0x2f3   : > { %v1122_v15 = vadd.f32 %v1861_v12, %v2389_v1  ;;  %v1113_v16 = vpop.f32.mrb[31].mxu1 }
 0x2f4   : > { %v1114_v27 = vadd.f32 %v2389_v1, %v1113_v16 }
 0x2f5   : > { %v1629_v18 = vpack.c.bf16 %v1122_v15, %v1119_v13 }
 0x2f6   : > { %v1624_v19 = vpack.c.bf16 %v1114_v27, %v1111_v17 }
 0x2f7   : > { %1693 = vst [vmem:[%s2397_s12 + $0x18] sm:$0xff] %v1629_v18  }
 0x2f8   : > { %1692 = vst [vmem:[%s2397_s12 + $0x10] sm:$0xff] %v1624_v19   ;;  %v1864_v20 = vpop.f32.mrb[32].mxu1 }
 0x2f9   : > { %v1126_v21 = vpop.f32.mrb[33].mxu1  ;;  %v1135_v23 = vadd.f32 %v1864_v20, %v2389_v1 }
 0x2fa   : > { %v1865_v22 = vpop.f32.mrb[34].mxu1  ;;  %v1127_v28 = vadd.f32 %v2389_v1, %v1126_v21 }
 0x2fb   : > { %v1138_v24 = vadd.f32 %v1865_v22, %v2389_v1  ;;  %v1129_v25 = vpop.f32.mrb[35].mxu1 }
 0x2fc   : > { %v1130_v26 = vadd.f32 %v2389_v1, %v1129_v25 }
 0x2fd   : > { %v1639_v29 = vpack.c.bf16 %v1138_v24, %v1135_v23 }
 0x2fe   : > { %v1634_v30 = vpack.c.bf16 %v1130_v26, %v1127_v28 }
 0x2ff   : > { %1695 = vst [vmem:[%s2397_s12 + $0x28] sm:$0xff] %v1639_v29  }
 0x300   : > { %1694 = vst [vmem:[%s2397_s12 + $0x20] sm:$0xff] %v1634_v30   ;;  %v1868_v31 = vpop.f32.mrb[36].mxu1 }
 0x301   : > { %v1142_v32 = vpop.f32.mrb[37].mxu1  ;;  %v1151_v34 = vadd.f32 %v1868_v31, %v2389_v1 }
 0x302   : > { %v1869_v33 = vpop.f32.mrb[38].mxu1  ;;  %v1143_v37 = vadd.f32 %v2389_v1, %v1142_v32 }
 0x303   : > { %v1154_v35 = vadd.f32 %v1869_v33, %v2389_v1  ;;  %v1145_v36 = vpop.f32.mrb[39].mxu1 }
 0x304   : > { %v1146_v38 = vadd.f32 %v2389_v1, %v1145_v36 }
 0x305   : > { %v1649_v39 = vpack.c.bf16 %v1154_v35, %v1151_v34 }
 0x306   : > { %v1644_v40 = vpack.c.bf16 %v1146_v38, %v1143_v37 }
 0x307   : > { %1697 = vst [vmem:[%s2397_s12 + $0x38] sm:$0xff] %v1649_v39  }
 0x308   : > { %1696 = vst [vmem:[%s2397_s12 + $0x30] sm:$0xff] %v1644_v40   ;;  %v1872_v41 = vpop.f32.mrb[40].mxu1 }
 0x309   : > { %v1158_v42 = vpop.f32.mrb[41].mxu1  ;;  %v1167_v44 = vadd.f32 %v1872_v41, %v2389_v1 }
 0x30a   : > { %v1873_v43 = vpop.f32.mrb[42].mxu1  ;;  %v1159_v47 = vadd.f32 %v2389_v1, %v1158_v42 }
 0x30b   : > { %v1170_v45 = vadd.f32 %v1873_v43, %v2389_v1  ;;  %v1161_v46 = vpop.f32.mrb[43].mxu1 }
 0x30c   : > { %v1162_v48 = vadd.f32 %v2389_v1, %v1161_v46 }
 0x30d   : > { %v1659_v49 = vpack.c.bf16 %v1170_v45, %v1167_v44 }
 0x30e   : > { %v1654_v50 = vpack.c.bf16 %v1162_v48, %v1159_v47 }
 0x30f   : > { %1699 = vst [vmem:[%s2397_s12 + $0x48] sm:$0xff] %v1659_v49  }
 0x310   : > { %1698 = vst [vmem:[%s2397_s12 + $0x40] sm:$0xff] %v1654_v50   ;;  %v1876_v51 = vpop.f32.mrb[44].mxu1 }
 0x311   : > { %v1174_v52 = vpop.f32.mrb[45].mxu1  ;;  %v1183_v54 = vadd.f32 %v1876_v51, %v2389_v1 }
 0x312   : > { %v1877_v53 = vpop.f32.mrb[46].mxu1  ;;  %v1175_v57 = vadd.f32 %v2389_v1, %v1174_v52 }
 0x313   : > { %v1186_v55 = vadd.f32 %v1877_v53, %v2389_v1  ;;  %v1177_v56 = vpop.f32.mrb[47].mxu1 }
 0x314   : > { %v1178_v58 = vadd.f32 %v2389_v1, %v1177_v56 }
 0x315   : > { %v1669_v59 = vpack.c.bf16 %v1186_v55, %v1183_v54 }
 0x316   : > { %v1664_v60 = vpack.c.bf16 %v1178_v58, %v1175_v57 }
 0x317   : > { %1701 = vst [vmem:[%s2397_s12 + $0x58] sm:$0xff] %v1669_v59  }
 0x318   : > { %1700 = vst [vmem:[%s2397_s12 + $0x50] sm:$0xff] %v1664_v60   ;;  %v1880_v61 = vpop.f32.mrb[48].mxu1 }
 0x319   : > { %v1190_v62 = vpop.f32.mrb[49].mxu1  ;;  %v1199_v0 = vadd.f32 %v1880_v61, %v2389_v1 }
 0x31a   : > { %v1881_v63 = vpop.f32.mrb[50].mxu1  ;;  %v1191_v14 = vadd.f32 %v2389_v1, %v1190_v62 }
 0x31b   : > { %v1202_v2 = vadd.f32 %v1881_v63, %v2389_v1  ;;  %v1193_v3 = vpop.f32.mrb[51].mxu1 }
 0x31c   : > { %v1194_v4 = vadd.f32 %v2389_v1, %v1193_v3 }
 0x31d   : > { %v1679_v5 = vpack.c.bf16 %v1202_v2, %v1199_v0 }
 0x31e   : > { %v1674_v6 = vpack.c.bf16 %v1194_v4, %v1191_v14 }
 0x31f   : > { %1703 = vst [vmem:[%s2397_s12 + $0x68] sm:$0xff] %v1679_v5  }
 0x320   : > { %1702 = vst [vmem:[%s2397_s12 + $0x60] sm:$0xff] %v1674_v6   ;;  %v1884_v7 = vpop.f32.mrb[52].mxu1 }
 0x321   : > { %v1206_v8 = vpop.f32.mrb[53].mxu1  ;;  %v1215_v10 = vadd.f32 %v1884_v7, %v2389_v1 }
 0x322   : > { %v1885_v9 = vpop.f32.mrb[54].mxu1  ;;  %v1207_v13 = vadd.f32 %v2389_v1, %v1206_v8 }
 0x323   : > { %v1218_v11 = vadd.f32 %v1885_v9, %v2389_v1  ;;  %v1209_v12 = vpop.f32.mrb[55].mxu1 }
 0x324   : > { %v1210_v15 = vadd.f32 %v2389_v1, %v1209_v12 }
 0x325   : > { %v1689_v16 = vpack.c.bf16 %v1218_v11, %v1215_v10 }
 0x326   : > { %v1684_v17 = vpack.c.bf16 %v1210_v15, %v1207_v13 }
 0x327   : > { %1705 = vst [vmem:[%s2397_s12 + $0x78] sm:$0xff] %v1689_v16  }
 0x328   : > { %1704 = vst [vmem:[%s2397_s12 + $0x70] sm:$0xff] %v1684_v17  }
 0x329   : > { %2011 = shalt.err (!%p2008_p2)
}
 0x32a   : > { %s2012_s19 = scalar_lea.hbm %s2446_s20, 2048  ;;  %s2016_s12 = scalar_lea.hbm %s2501_s7, 4096 }
 0x32b   : > { %p2013_p4 = scmp.ne.s32.totalorder %s2446_s20, %s2012_s19  ;;  %p2017_p9 = scmp.lt.u32.totalorder %s2446_s20, %s2501_s7 }
 0x32c   : > { %p2018_p1 = scmp.lt.u32.totalorder %s2016_s12, %s2012_s19  ;;  %p2020_p6 = scmp.lt.u32.totalorder %s2012_s19, %s2446_s20 }
 0x32d   : > { %p2014_p5 = pnand %p2013_p4, %p2508_p11 }
 0x32e   : > { %p2019_p3 = por %p2018_p1, %p2017_p9 }
 0x32f   : > { %p2015_p7 = pneg %p2014_p5 }
 0x330   : > { %p2021_p12 = por %p2020_p6, %p2019_p3 }
 0x332   : > { %p2022_p13 = pnand %p2021_p12, %p2015_p7 }
 0x334   : > { %2025 = shalt.err (!%p2022_p13)
}
 0x335   : > { %s2070_s18 = smov 64   ;;  %s2071_s22 = smov 4  }
 0x336   : > { %1892 = dma.vmem_to_hbm [thread:$0]  (%p2508_p11), %s2448_s8, 2048, %s2446_s20, %s1382_s28, %s2070_s18, %s2070_s18, %s2071_s22  }
 0x337 PF: > { %s1410_s15 = sand.u32 1, %s2052_s24   ;;  %p2509_p8 = scmp.ne.s32.totalorder %s2506_s14, 0 }
 0x338   : > { %p2510_p10 = scmp.ge.s32.totalorder %s2064_s27, 2  ;;  %s1411_s23 = scalar_lea.sflag [#allocation4], %s1410_s15 }
 0x33a   : > { %p1899_p0 = pnand %p2510_p10, %p2509_p8 }
 0x33c   : > { %2047 = dma.done.wait (!%p1899_p0), %s1411_s23, 2048  }
 0x33d   : > { %2049 = vsyncadd (!%p1899_p0), %s1411_s23, 4294965248  ;;  %p20_p2 = scmp.ge.s32.totalorder %s2137_s30, 4   ;;  %s2511_s24 = smov %s2056_s25 }
 0x33e   : > { %s2512_s25 = smov %s2060_s26  ;;  %s2513_s26 = smov %s2149_s10 }
 0x33f   : > { %s2514_s27 = smov %s2137_s30  ;;  %22 = sbr.rel (!%p20_p2) target bundleno = 5 (0x5), region = 93 }
 0x346   :  { %1416 = vsyncpa [#allocation3], 1 }
 0x347   :  { %1418 = vsyncpa [#allocation3 + $0x1], 1 }
 0x348   :  { %1419 = vsyncpa [#allocation4], 1 }
 0x349   :  { %1421 = vsyncpa [#allocation4 + $0x1], 1 }

</bundles_post_ra>
